<compile_context>
chip_gen: v5e
topology: v5e:2x2
jax: 0.10.0
libtpu: 0.0.40
codegen_flags: <defaults>
</compile_context>

<pallas_src>
import jax
import jax.numpy as jnp
from jax.experimental import pallas as pl
from jax.experimental.pallas import tpu as pltpu


def _add_kernel(a_ref, b_ref, o_ref):
    # Pure f32 elementwise add: 2 vld + 1 VALU + 1 vst per vreg, irreducibly
    # HBM-bound on all of v5e/v6e/v7x. Keep the body free of transcendentals.
    o_ref[...] = a_ref[...] + b_ref[...]


def pallas_add(a: jax.Array, b: jax.Array) -> jax.Array:
    assert a.shape == b.shape and a.dtype == b.dtype
    orig_shape = a.shape
    n = a.size
    itemsize = jnp.dtype(a.dtype).itemsize

    # Pick the widest lane dim (multiple of 128) that divides n exactly:
    # wider last dim -> unmasked vst + larger contiguous DMA descriptors.
    lane = None
    for cand in (2048, 1024, 512, 256, 128):
        if n % cand == 0:
            lane = cand
            break
    if lane is None:
        # Element count not a multiple of 128: a padded standalone kernel
        # would cost more than the add itself, so let XLA fuse it.
        # TODO(synk): never hit for this module's 1x256x7x7 inputs.
        return a + b

    rows = n // lane
    a2 = a.reshape(rows, lane)   # zero-copy layout change, no pad
    b2 = b.reshape(rows, lane)

    slab_bytes = rows * lane * itemsize

    if slab_bytes <= (2 << 20):
        # Single full-array block (no grid). For this module: (49, 256) f32
        # = ~50 KB per array; one DMA in per input, one DMA out.
        out2 = pl.pallas_call(
            _add_kernel,
            out_shape=jax.ShapeDtypeStruct((rows, lane), a.dtype),
        )(a2, b2)
        return out2.reshape(orig_shape)

    # ---- Large-tensor path (not hit by this module's shape) ----
    # Minimum sublane tile per dtype width so blocks always lower cleanly.
    sub_min = {4: 8, 2: 16, 1: 32}.get(itemsize, 8)
    # <= ~1 MiB per buffer keeps full double-buffering within the default
    # scoped-VMEM limit on every generation (incl. v7x's 64 MiB VMEM).
    block_rows = max(sub_min, min(rows, (1 << 20) // (lane * itemsize)))
    block_rows = (block_rows // sub_min) * sub_min
    grid = (pl.cdiv(rows, block_rows),)

    out2 = pl.pallas_call(
        _add_kernel,
        out_shape=jax.ShapeDtypeStruct((rows, lane), a.dtype),
        grid_spec=pltpu.PrefetchScalarGridSpec(
            num_scalar_prefetch=0,
            grid=grid,
            in_specs=[
                pl.BlockSpec((block_rows, lane), lambda i: (i, 0)),
                pl.BlockSpec((block_rows, lane), lambda i: (i, 0)),
            ],
            out_specs=pl.BlockSpec((block_rows, lane), lambda i: (i, 0)),
        ),
        compiler_params=pltpu.CompilerParams(
            dimension_semantics=("parallel",)
        ),
    )(a2, b2)
    return out2.reshape(orig_shape)


if __name__ == "__main__":
    key = jax.random.PRNGKey(0)
    k1, k2 = jax.random.split(key)
    # Shapes match the module's forward: [1, 256, 7, 7] NCHW
    x394 = jax.random.normal(k1, (1, 256, 7, 7), dtype=jnp.float32)
    x379 = jax.random.normal(k2, (1, 256, 7, 7), dtype=jnp.float32)

    out = pallas_add(x394, x379)
    jax.block_until_ready(out)

    ref = x394 + x379
    assert out.shape == ref.shape
    assert jnp.allclose(out, ref, atol=1e-6), "mismatch vs reference"
    print("KERNEL_OK")
</pallas_src>

<mosaic_0001>
module attributes {stable_mosaic.version = 11 : i64} {
  func.func @_add_kernel(%arg0: memref<49x256xf32, #tpu.memory_space<vmem>>, %arg1: memref<49x256xf32, #tpu.memory_space<vmem>>, %arg2: memref<49x256xf32, #tpu.memory_space<vmem>>) attributes {dimension_semantics = [], scalar_prefetch = 0 : i64, scratch_operands = 0 : i64, tpu.core_type = #tpu.core_type<tc>} {
    %c0 = arith.constant 0 : index
    %c0_0 = arith.constant 0 : index
    %0 = vector.load %arg0[%c0, %c0_0] : memref<49x256xf32, #tpu.memory_space<vmem>>, vector<49x256xf32>
    %c0_1 = arith.constant 0 : index
    %c0_2 = arith.constant 0 : index
    %1 = vector.load %arg1[%c0_1, %c0_2] : memref<49x256xf32, #tpu.memory_space<vmem>>, vector<49x256xf32>
    %2 = arith.addf %0, %1 : vector<49x256xf32>
    %c0_3 = arith.constant 0 : index
    %c0_4 = arith.constant 0 : index
    %3 = vector.load %arg2[%c0_3, %c0_4] : memref<49x256xf32, #tpu.memory_space<vmem>>, vector<49x256xf32>
    tpu.vector_store %arg2[%c0_3, %c0_4], %2 {strides = array<i32>} : memref<49x256xf32, #tpu.memory_space<vmem>>, vector<49x256xf32>,
    return
  }
}

</mosaic_0001>

<bundles_post_ra>
// kernel: tpu_custom_call.1
= control target key start
LH: loop header
LB: loop body
LE: loop exit
PB: predicated region body
PF: predicated region fallthrough
CT: control target
= control target key end

     0   :  { %7 = vsyncpa [#allocation3], 0  ;;  %s241_s0 = inlined_call_operand.hbm [shape: f32[49,256], index: 0, kind: input, shape index: {}]   ;;  %s242_s1 = inlined_call_operand.hbm [shape: f32[49,256], index: 1, kind: input, shape index: {}]   ;;  %s243_s2 = inlined_call_operand.hbm [shape: f32[49,256], index: 2, kind: output, shape index: {}]  }
   0x1   :  { %8 = vsyncpa [#allocation6], 0 }
   0x2   :  { %9 = vsyncpa [#allocation4], 0  ;;  %s14_s11 = sshll.u32 %s241_s0, 4  ;;  %s203_s12 = smov [#allocation2]   ;;  %s15_s11 = int_to_ptr.hbm [resolvable:$true] %s14_s11 }
   0x3   :  { %s16_s13 = sshll.u32 %s203_s12, 4  ;;  %s27_s16 = sshll.u32 %s242_s1, 4  ;;  %s17_s13 = int_to_ptr.vmem [resolvable:$true] %s16_s13  ;;  %s28_s16 = int_to_ptr.hbm [resolvable:$true] %s27_s16 }
   0x4   :  { %s204_s17 = smov 256   ;;  %s205_s18 = smov 16  }
   0x5   :  { %22 = dma.hbm_to_vmem [thread:$0]  %s15_s11, 1792, %s17_s13, [#allocation3], %s204_s17, %s204_s17, %s205_s18  }
   0x6   :  { %s206_s19 = smov [#allocation5]  }
   0x7   :  { %s29_s20 = sshll.u32 %s206_s19, 4  ;;  %s30_s20 = int_to_ptr.vmem [resolvable:$true] %s29_s20 }
   0x8   :  { %35 = dma.hbm_to_vmem [thread:$0]  %s28_s16, 1792, %s30_s20, [#allocation6], %s204_s17, %s204_s17, %s205_s18  }
   0x9   :  { %197 = dma.done.wait [#allocation3], 1792  }
   0xa   :  { %198 = vsyncadd [#allocation3], 4294965504 }
   0xb   :  { %199 = dma.done.wait [#allocation6], 1792  }
   0xc   :  { %200 = vsyncadd [#allocation6], 4294965504  ;;  %v44_v0 = vld [vmem:[#allocation2] sm:$0xff]  ;;  %v58_v1 = vld [vmem:[#allocation5] sm:$0xff]  ;;  %s207_s0 = smov [#allocation7]   ;;  %s106_s23 = sshll.u32 %s243_s2, 4  ;;  %s107_s23 = int_to_ptr.hbm [resolvable:$true] %s106_s23 }
   0xd   :  { %v45_v2 = vld [vmem:[#allocation2 + $0x8] sm:$0xff]  ;;  %v72_v3 = vadd.f32 %v58_v1, %v44_v0  ;;  %v59_v4 = vld [vmem:[#allocation5 + $0x8] sm:$0xff]  ;;  %v46_v5 = vld [vmem:[#allocation2 + $0x10] sm:$0xff]  ;;  %s104_s1 = sshll.u32 %s207_s0, 4  ;;  %s105_s1 = int_to_ptr.vmem [resolvable:$true] %s104_s1 }
   0xe   :  { %v60_v6 = vld [vmem:[#allocation5 + $0x10] sm:$0xff]  ;;  %v73_v7 = vadd.f32 %v59_v4, %v45_v2  ;;  %v47_v9 = vld [vmem:[#allocation2 + $0x18] sm:$0xff]  ;;  %v61_v10 = vld [vmem:[#allocation5 + $0x18] sm:$0xff] }
   0xf   :  { %v74_v8 = vadd.f32 %v60_v6, %v46_v5  ;;  %v48_v11 = vld [vmem:[#allocation2 + $0x20] sm:$0xff]  ;;  %86 = vst [vmem:[#allocation7] sm:$0xff] %v72_v3  ;;  %v75_v12 = vadd.f32 %v61_v10, %v47_v9  ;;  %v62_v13 = vld [vmem:[#allocation5 + $0x20] sm:$0xff]  ;;  %v49_v14 = vld [vmem:[#allocation2 + $0x28] sm:$0xff] }
  0x10   :  { %v63_v15 = vld [vmem:[#allocation5 + $0x28] sm:$0xff]  ;;  %87 = vst [vmem:[#allocation7 + $0x8] sm:$0xff] %v73_v7  ;;  %v76_v16 = vadd.f32 %v62_v13, %v48_v11  ;;  %v50_v18 = vld [vmem:[#allocation2 + $0x30] sm:$0xff]  ;;  %v64_v19 = vld [vmem:[#allocation5 + $0x30] sm:$0xff] }
  0x11   :  { %v77_v17 = vadd.f32 %v63_v15, %v49_v14  ;;  %v51_v20 = vld [vmem:[#allocation2 + $0x38] sm:$0xff]  ;;  %88 = vst [vmem:[#allocation7 + $0x10] sm:$0xff] %v74_v8  ;;  %v78_v21 = vadd.f32 %v64_v19, %v50_v18  ;;  %v65_v22 = vld [vmem:[#allocation5 + $0x38] sm:$0xff]  ;;  %v52_v23 = vld [vmem:[#allocation2 + $0x40] sm:$0xff] }
  0x12   :  { %v66_v24 = vld [vmem:[#allocation5 + $0x40] sm:$0xff]  ;;  %89 = vst [vmem:[#allocation7 + $0x18] sm:$0xff] %v75_v12  ;;  %v79_v25 = vadd.f32 %v65_v22, %v51_v20  ;;  %v53_v26 = vld [vmem:[#allocation2 + $0x48] sm:$0xff]  ;;  %v67_v27 = vld [vmem:[#allocation5 + $0x48] sm:$0xff] }
  0x13   :  { %v54_v28 = vld [vmem:[#allocation2 + $0x50] sm:$0xff]  ;;  %90 = vst [vmem:[#allocation7 + $0x20] sm:$0xff] %v76_v16  ;;  %v80_v29 = vadd.f32 %v66_v24, %v52_v23  ;;  %v68_v30 = vld [vmem:[#allocation5 + $0x50] sm:$0xff]  ;;  %v55_v31 = vld [vmem:[#allocation2 + $0x58] sm:$0xff]  ;;  %v81_v33 = vadd.f32 %v67_v27, %v53_v26 }
  0x14   :  { %v69_v32 = vld [vmem:[#allocation5 + $0x58] sm:$0xff]  ;;  %91 = vst [vmem:[#allocation7 + $0x28] sm:$0xff] %v77_v17  ;;  %v56_v34 = vld [vmem:[#allocation2 + $0x60] sm:$0x1]  ;;  %v70_v35 = vld [vmem:[#allocation5 + $0x60] sm:$0x1]  ;;  %v82_v36 = vadd.f32 %v68_v30, %v54_v28 }
  0x15   :  { %92 = vst [vmem:[#allocation7 + $0x30] sm:$0xff] %v78_v21  ;;  %v57_v37 = vld [vmem:[#allocation2 + $0x68] sm:$0x1]  ;;  %v71_v38 = vld [vmem:[#allocation5 + $0x68] sm:$0x1]  ;;  %v83_v39 = vadd.f32 %v69_v32, %v55_v31  ;;  %v84_v40 = vadd.f32 %v70_v35, %v56_v34 }
  0x16   :  { %93 = vst [vmem:[#allocation7 + $0x38] sm:$0xff] %v79_v25  ;;  %v85_v41 = vadd.f32 %v71_v38, %v57_v37 }
  0x17   :  { %94 = vst [vmem:[#allocation7 + $0x40] sm:$0xff] %v80_v29 }
  0x18   :  { %95 = vst [vmem:[#allocation7 + $0x48] sm:$0xff] %v81_v33 }
  0x19   :  { %96 = vst [vmem:[#allocation7 + $0x50] sm:$0xff] %v82_v36 }
  0x1a   :  { %97 = vst [vmem:[#allocation7 + $0x58] sm:$0xff] %v83_v39 }
  0x1b   :  { %98 = vst [vmem:[#allocation7 + $0x60] sm:$0x1] %v84_v40 }
  0x1c   :  { %99 = vst [vmem:[#allocation7 + $0x68] sm:$0x1] %v85_v41 }
  0x1d   :  { %112 = dma.vmem_to_hbm [thread:$0]  %s105_s1, 1792, %s107_s23, [#allocation4], %s204_s17, %s204_s17, %s205_s18  }
  0x1e   :  { %201 = dma.done.wait [#allocation4], 1792  }
  0x1f   :  { %202 = vsyncadd [#allocation4], 4294965504 }
  0x20   :  { %117 = vsyncpa [#allocation3], 1 }
  0x21   :  { %118 = vsyncpa [#allocation6], 1 }
  0x22   :  { %119 = vsyncpa [#allocation4], 1 }

</bundles_post_ra>
